<compile_context>
chip_gen: v7x
topology: tpu7x:2x2x1
jax: 0.10.0
libtpu: 0.0.40
codegen_flags: <defaults>
</compile_context>

<pallas_src>
import functools

import jax
import jax.numpy as jnp
from jax import lax
from jax.experimental import pallas as pl
from jax.experimental.pallas import tpu as pltpu


def _round_up(x, m):
    return ((x + m - 1) // m) * m


# ----------------------- kernel A: serial GRU recurrence -------------------- #

def _gru_recurrence_kernel(gi_ref, h0_ref, whh_ref, bhhn_ref,
                           hseq_ref, hlast_ref, *, hidden, gate_stride, unroll):
    """Serial GRU recurrence; only h @ Whh + gating per step (inputs hoisted).

    gi_ref:   (T, Bp, 3*Hg) bf16  precomputed input->gate projections (+ biases)
    h0_ref:   (Bp, H)       f32   initial hidden (context vector)
    whh_ref:  (H, 3*Hg)     f32   hidden->gate weights, gate g at cols [g*Hg, g*Hg+H)
    bhhn_ref: (1, H)        f32   b_hh of the n gate (multiplied by r in-loop)
    hseq_ref: (T, Bp, H)    bf16  per-step hidden states (feeds output projection)
    hlast_ref:(Bp, H)       f32   final hidden state
    """
    T = gi_ref.shape[0]
    H = hidden
    Hg = gate_stride

    whh = whh_ref[...]
    bhhn = bhhn_ref[...]

    # TODO(synk): hold Whh stationary in MXU weight registers across the loop
    # (pltpu.matmul_push_rhs / matmul_acc_lhs / matmul_pop); skipped to keep
    # lowering robust -- with packed gates Whh is only (H, 3H) so the per-step
    # weight reload is already small.
    def step(t, h):
        gi = gi_ref[t].astype(jnp.float32)                                # (Bp, 3Hg)
        gh = jnp.dot(h, whh, preferred_element_type=jnp.float32)          # (Bp, 3Hg)
        s = gi + gh
        r = jax.nn.sigmoid(s[:, 0:H])
        z = jax.nn.sigmoid(s[:, Hg:Hg + H])
        n = jnp.tanh(gi[:, 2 * Hg:2 * Hg + H]
                     + r * (gh[:, 2 * Hg:2 * Hg + H] + bhhn))
        h_new = (1.0 - z) * n + z * h
        hseq_ref[t] = h_new.astype(hseq_ref.dtype)
        return h_new

    h_final = lax.fori_loop(0, T, step, h0_ref[...], unroll=unroll)
    hlast_ref[...] = h_final


# --------------- kernel B: tiled output Linear + LogSoftmax ----------------- #

def _out_logsoftmax_kernel(h_ref, w_ref, b_ref, out_ref, m_scr, l_scr, *, vocab):
    """One (row-tile, vocab-tile) step of logits + online log-softmax.

    h_ref:   (tm, H)  bf16   hidden rows (resident across the vocab axis)
    w_ref:   (H, tn)  bf16   streamed wout column block
    b_ref:   (1, tn)  f32    bias column block
    out_ref: (tm, Vp) f32    full-vocab row slab, resident across the vocab axis
    m_scr/l_scr: (tm, 1) f32 online max / sum-exp accumulators
    """
    j = pl.program_id(1)
    nj = pl.num_programs(1)
    tn = w_ref.shape[1]

    @pl.when(j == 0)
    def _():
        m_scr[...] = jnp.full(m_scr.shape, -jnp.inf, jnp.float32)
        l_scr[...] = jnp.zeros(l_scr.shape, jnp.float32)

    logits = jnp.dot(h_ref[...], w_ref[...],
                     preferred_element_type=jnp.float32) + b_ref[...]
    if out_ref.shape[1] > vocab:  # mask padded vocab columns (f32-safe -1e30)
        col = j * tn + lax.broadcasted_iota(jnp.int32, logits.shape, 1)
        logits = jnp.where(col < vocab, logits, jnp.float32(-1e30))

    m_prev = m_scr[...]
    m_new = jnp.maximum(m_prev, jnp.max(logits, axis=-1, keepdims=True))
    l_scr[...] = (l_scr[...] * jnp.exp(m_prev - m_new)
                  + jnp.sum(jnp.exp(logits - m_new), axis=-1, keepdims=True))
    m_scr[...] = m_new

    # Write raw logits into the resident row slab (128-aligned column offset).
    out_ref[:, pl.ds(pl.multiple_of(j * tn, 128), tn)] = logits

    @pl.when(j == nj - 1)
    def _():
        lse = m_scr[...] + jnp.log(l_scr[...])
        out_ref[...] = out_ref[...] - lse        # in-place normalize, single HBM store


# ------------------------------- wrapper ------------------------------------ #

def init_decoder_params(key, word_vec_d, hidden_size, output_size):
    """Deterministic synthetic parameters with PyTorch-style shapes."""
    E, H, V = word_vec_d, hidden_size, output_size
    bound = 1.0 / float(H) ** 0.5
    ks = jax.random.split(key, 6)

    def u(k, shape):
        return jax.random.uniform(k, shape, jnp.float32, -bound, bound)

    return {
        # nn.GRU(E, H): gate order (r, z, n)
        "w_ih": u(ks[0], (3 * H, E)), "w_hh": u(ks[1], (3 * H, H)),
        "b_ih": u(ks[2], (3 * H,)),   "b_hh": u(ks[3], (3 * H,)),
        # nn.Linear(H, V)
        "w_out": u(ks[4], (V, H)),    "b_out": u(ks[5], (V,)),
    }


def decoder_forward(params, emb_table, context_vector, target_vars, sos_id):
    """context_vector: (1, B, H); target_vars: (B, T) int tokens.

    Returns:
      decoder_outputs: (T, B, V) log-softmax scores per step
      decoder_hidden:  (1, B, H) final GRU hidden state
    """
    B, T = target_vars.shape
    V, H = params["w_out"].shape

    Bp = _round_up(max(B, 8), 8)                 # sublane padding
    # Packed gates when 3H fits in one 128-lane block; per-gate-128 otherwise.
    Hg = H if 3 * H <= 128 else _round_up(H, 128)
    G = 3 * Hg
    Vp = _round_up(V, 128)                       # lane-dense output

    # ---- Teacher-forced tokens, time-major (tiny int matrix only). ----
    tok_tm = jnp.concatenate(
        [jnp.full((1, B), sos_id, jnp.int32),
         target_vars[:, :T - 1].astype(jnp.int32).T], axis=0)        # (T, B)
    tok_tm = jnp.pad(tok_tm, ((0, 0), (0, Bp - B)))                  # (T, Bp)

    # ---- Input->gate projection fused with the embedding lookup (XLA). ----
    # gather(emb)[tok] @ Wih^T == (emb @ Wih^T)[tok]: project the table once,
    # gather (T, Bp, 3Hg) gate pre-activations; never materialize (T, Bp, E).
    w_ih, w_hh = params["w_ih"], params["w_hh"]
    b_ih, b_hh = params["b_ih"], params["b_hh"]
    emb_f32 = emb_table.astype(jnp.float32)
    emb_proj = jnp.zeros((emb_table.shape[0], G), jnp.float32)
    for g in range(3):
        emb_proj = emb_proj.at[:, g * Hg:g * Hg + H].set(
            emb_f32 @ w_ih[g * H:(g + 1) * H, :].T)
    bias = jnp.zeros((G,), jnp.float32)
    bias = bias.at[0 * Hg:0 * Hg + H].set(b_ih[0:H] + b_hh[0:H])           # r
    bias = bias.at[1 * Hg:1 * Hg + H].set(b_ih[H:2 * H] + b_hh[H:2 * H])   # z
    bias = bias.at[2 * Hg:2 * Hg + H].set(b_ih[2 * H:3 * H])               # n
    gi = (emb_proj + bias)[tok_tm].astype(jnp.bfloat16)              # (T, Bp, G)

    whh = jnp.zeros((H, G), jnp.float32)
    for g in range(3):
        whh = whh.at[:, g * Hg:g * Hg + H].set(w_hh[g * H:(g + 1) * H, :].T)
    bhhn = b_hh[2 * H:3 * H].reshape(1, H)

    h0 = jnp.zeros((Bp, H), jnp.float32).at[:B].set(
        context_vector[0].astype(jnp.float32))

    # ---- Unroll heuristic: full unroll only if per-step live set is tiny. ----
    per_step_vregs = max(1, (Bp * (2 * G + 3 * H) * 4 + 4095) // 4096)
    if per_step_vregs <= 24 and T <= 32:
        unroll = True
    else:
        unroll = max(1, min(8, 24 // per_step_vregs))

    vmem = pl.BlockSpec(memory_space=pltpu.MemorySpace.VMEM)
    bytes_a = (gi.size * 2 + h0.size * 4 + whh.size * 4 + bhhn.size * 4
               + T * Bp * H * 2 + Bp * H * 4)
    lim_a = int(min(48 * 2**20, max(32 * 2**20, 2 * bytes_a)))

    h_seq, h_last = pl.pallas_call(
        functools.partial(_gru_recurrence_kernel,
                          hidden=H, gate_stride=Hg, unroll=unroll),
        out_shape=(jax.ShapeDtypeStruct((T, Bp, H), jnp.bfloat16),
                   jax.ShapeDtypeStruct((Bp, H), jnp.float32)),
        in_specs=[vmem] * 4,
        out_specs=(vmem, vmem),
        compiler_params=pltpu.CompilerParams(vmem_limit_bytes=lim_a),
    )(gi, h0, whh, bhhn)

    # ---- Output Linear + LogSoftmax: grid-tiled, pipelined pallas_call. ----
    wout = jnp.zeros((H, Vp), jnp.float32).at[:, :V].set(
        params["w_out"].T).astype(jnp.bfloat16)
    bout = jnp.zeros((1, Vp), jnp.float32).at[0, :V].set(params["b_out"])

    M = T * Bp
    tm = M if M < 256 else 256                   # feed >=256 MXU rows when available
    M_pad = _round_up(M, tm)
    tn = 512 if Vp % 512 == 0 else (256 if Vp % 256 == 0 else 128)

    h_all = jnp.pad(h_seq.reshape(M, H), ((0, M_pad - M), (0, 0)))

    bytes_b = 2 * (tm * H * 2 + H * tn * 2 + tn * 4) + 2 * tm * Vp * 4 + 4 * tm * 4
    lim_b = int(min(48 * 2**20, max(32 * 2**20, 2 * bytes_b)))

    logprobs = pl.pallas_call(
        functools.partial(_out_logsoftmax_kernel, vocab=V),
        out_shape=jax.ShapeDtypeStruct((M_pad, Vp), jnp.float32),
        grid_spec=pltpu.PrefetchScalarGridSpec(
            num_scalar_prefetch=0,
            grid=(M_pad // tm, Vp // tn),
            in_specs=[
                pl.BlockSpec((tm, H), lambda i, j: (i, 0)),
                pl.BlockSpec((H, tn), lambda i, j: (0, j)),
                pl.BlockSpec((1, tn), lambda i, j: (0, j)),
            ],
            out_specs=pl.BlockSpec((tm, Vp), lambda i, j: (i, 0)),
            scratch_shapes=[pltpu.VMEM((tm, 1), jnp.float32),
                            pltpu.VMEM((tm, 1), jnp.float32)],
        ),
        compiler_params=pltpu.CompilerParams(
            dimension_semantics=("parallel", "arbitrary"),
            vmem_limit_bytes=lim_b),
    )(h_all, wout, bout)

    decoder_outputs = logprobs[:M].reshape(T, Bp, Vp)[:, :B, :V]    # (T, B, V)
    decoder_hidden = h_last[None, :B, :H]                           # (1, B, H)
    return decoder_outputs, decoder_hidden


# ------------------------- pure-JAX reference ------------------------------- #

def decoder_reference(params, emb_table, context_vector, target_vars, sos_id):
    B, T = target_vars.shape
    H = params["w_hh"].shape[1]
    w_ih, w_hh = params["w_ih"], params["w_hh"]
    b_ih, b_hh = params["b_ih"], params["b_hh"]
    w_out, b_out = params["w_out"], params["b_out"]

    h = context_vector[0].astype(jnp.float32)                 # (B, H)
    dec_in = jnp.full((B,), sos_id, jnp.int32)
    outs = []
    for t in range(T):
        e = emb_table[dec_in].astype(jnp.float32)             # (B, E)
        gi = e @ w_ih.T + b_ih
        gh = h @ w_hh.T + b_hh
        r = jax.nn.sigmoid(gi[:, :H] + gh[:, :H])
        z = jax.nn.sigmoid(gi[:, H:2 * H] + gh[:, H:2 * H])
        n = jnp.tanh(gi[:, 2 * H:] + r * gh[:, 2 * H:])
        h = (1.0 - z) * n + z * h
        logits = h @ w_out.T + b_out
        outs.append(jax.nn.log_softmax(logits, axis=1))
        dec_in = target_vars[:, t].astype(jnp.int32)          # teacher forcing
    return jnp.stack(outs, axis=0), h[None]


# --------------------------------- main -------------------------------------- #

if __name__ == "__main__":
    B, T = 2, 8                   # batch, max target length
    E, H, V = 32, 32, 1000        # word_vec_d, hidden_size, output_size
    SOS_ID = 1

    key = jax.random.PRNGKey(0)
    k_par, k_emb, k_ctx, k_tgt = jax.random.split(key, 4)

    params = init_decoder_params(k_par, E, H, V)
    emb_table = jax.random.normal(k_emb, (V, E), jnp.float32) * 0.1
    context_vector = jax.random.normal(k_ctx, (1, B, H), jnp.float32)
    target_vars = jax.random.randint(k_tgt, (B, T), 0, V, jnp.int32)

    outputs, hidden = jax.block_until_ready(
        decoder_forward(params, emb_table, context_vector, target_vars, SOS_ID))

    ref_outputs, ref_hidden = decoder_reference(
        params, emb_table, context_vector, target_vars, SOS_ID)

    assert outputs.shape == (T, B, V)
    assert hidden.shape == (1, B, H)
    # bf16 weights/activations in the kernel path -> compare with loose tolerance.
    assert jnp.allclose(outputs, ref_outputs, atol=3e-2, rtol=3e-2), (
        float(jnp.max(jnp.abs(outputs - ref_outputs))))
    assert jnp.allclose(hidden, ref_hidden, atol=3e-2, rtol=3e-2), (
        float(jnp.max(jnp.abs(hidden - ref_hidden))))

    print("KERNEL_OK")
</pallas_src>

<mosaic_0001>
module attributes {stable_mosaic.version = 11 : i64} {
  func.func @_gru_recurrence_kernel(%arg0: memref<8x8x96xbf16, #tpu.memory_space<vmem>>, %arg1: memref<8x32xf32, #tpu.memory_space<vmem>>, %arg2: memref<32x96xf32, #tpu.memory_space<vmem>>, %arg3: memref<1x32xf32, #tpu.memory_space<vmem>>, %arg4: memref<8x8x32xbf16, #tpu.memory_space<vmem>>, %arg5: memref<8x32xf32, #tpu.memory_space<vmem>>) attributes {dimension_semantics = [], scalar_prefetch = 0 : i64, scratch_operands = 0 : i64, tpu.core_type = #tpu.core_type<tc>} {
    %c0 = arith.constant 0 : index
    %c0_0 = arith.constant 0 : index
    %0 = vector.load %arg2[%c0, %c0_0] : memref<32x96xf32, #tpu.memory_space<vmem>>, vector<32x96xf32>
    %c0_1 = arith.constant 0 : index
    %c0_2 = arith.constant 0 : index
    %1 = vector.load %arg3[%c0_1, %c0_2] : memref<1x32xf32, #tpu.memory_space<vmem>>, vector<1x32xf32>
    %c0_3 = arith.constant 0 : index
    %c0_4 = arith.constant 0 : index
    %2 = vector.load %arg1[%c0_3, %c0_4] : memref<8x32xf32, #tpu.memory_space<vmem>>, vector<8x32xf32>
    %c0_i32 = arith.constant 0 : i32
    %3 = arith.index_cast %c0_i32 : i32 to index
    %c0_5 = arith.constant 0 : index
    %c0_6 = arith.constant 0 : index
    %4 = vector.load %arg0[%3, %c0_5, %c0_6] : memref<8x8x96xbf16, #tpu.memory_space<vmem>>, vector<1x8x96xbf16>
    %5 = vector.shape_cast %4 : vector<1x8x96xbf16> to vector<8x96xbf16>
    %6 = arith.extf %5 : vector<8x96xbf16> to vector<8x96xf32>
    %cst = arith.constant dense<0.000000e+00> : vector<8x96xf32>
    %7 = tpu.matmul %2, %0, %cst {dimension_numbers = #tpu.dot_dimension_numbers<[1], [0], [0], [1], [0, 0, 1, 1], [], []>} : vector<8x32xf32>, vector<32x96xf32>, vector<8x96xf32> -> vector<8x96xf32>
    %8 = arith.addf %6, %7 : vector<8x96xf32>
    %9 = vector.extract_strided_slice %8 {offsets = [0, 0], sizes = [8, 32], strides = [1, 1]} : vector<8x96xf32> to vector<8x32xf32>
    %10 = arith.negf %9 : vector<8x32xf32>
    %11 = math.exp %10 : vector<8x32xf32>
    %cst_7 = arith.constant 1.000000e+00 : f32
    %12 = vector.broadcast %cst_7 : f32 to vector<8x32xf32>
    %13 = arith.addf %12, %11 : vector<8x32xf32>
    %14 = arith.divf %12, %13 : vector<8x32xf32>
    %15 = vector.extract_strided_slice %8 {offsets = [0, 32], sizes = [8, 32], strides = [1, 1]} : vector<8x96xf32> to vector<8x32xf32>
    %16 = arith.negf %15 : vector<8x32xf32>
    %17 = math.exp %16 : vector<8x32xf32>
    %cst_8 = arith.constant 1.000000e+00 : f32
    %18 = vector.broadcast %cst_8 : f32 to vector<8x32xf32>
    %19 = arith.addf %18, %17 : vector<8x32xf32>
    %20 = arith.divf %18, %19 : vector<8x32xf32>
    %21 = vector.extract_strided_slice %6 {offsets = [0, 64], sizes = [8, 32], strides = [1, 1]} : vector<8x96xf32> to vector<8x32xf32>
    %22 = vector.extract_strided_slice %7 {offsets = [0, 64], sizes = [8, 32], strides = [1, 1]} : vector<8x96xf32> to vector<8x32xf32>
    %23 = vector.broadcast %1 : vector<1x32xf32> to vector<8x32xf32>
    %24 = arith.addf %22, %23 : vector<8x32xf32>
    %25 = arith.mulf %14, %24 : vector<8x32xf32>
    %26 = arith.addf %21, %25 : vector<8x32xf32>
    %27 = math.tanh %26 : vector<8x32xf32>
    %cst_9 = arith.constant 1.000000e+00 : f32
    %28 = vector.broadcast %cst_9 : f32 to vector<8x32xf32>
    %29 = arith.subf %28, %20 : vector<8x32xf32>
    %30 = arith.mulf %29, %27 : vector<8x32xf32>
    %31 = arith.mulf %20, %2 : vector<8x32xf32>
    %32 = arith.addf %30, %31 : vector<8x32xf32>
    %33 = arith.truncf %32 : vector<8x32xf32> to vector<8x32xbf16>
    %34 = arith.index_cast %c0_i32 : i32 to index
    %c0_10 = arith.constant 0 : index
    %c0_11 = arith.constant 0 : index
    %35 = vector.load %arg4[%34, %c0_10, %c0_11] : memref<8x8x32xbf16, #tpu.memory_space<vmem>>, vector<1x8x32xbf16>
    %36 = vector.shape_cast %35 : vector<1x8x32xbf16> to vector<8x32xbf16>
    %37 = vector.shape_cast %33 : vector<8x32xbf16> to vector<1x8x32xbf16>
    tpu.vector_store %arg4[%34, %c0_10, %c0_11], %37 {strides = array<i32>} : memref<8x8x32xbf16, #tpu.memory_space<vmem>>, vector<1x8x32xbf16>,
    %c1_i32 = arith.constant 1 : i32
    %38 = arith.index_cast %c1_i32 : i32 to index
    %c0_12 = arith.constant 0 : index
    %c0_13 = arith.constant 0 : index
    %39 = vector.load %arg0[%38, %c0_12, %c0_13] : memref<8x8x96xbf16, #tpu.memory_space<vmem>>, vector<1x8x96xbf16>
    %40 = vector.shape_cast %39 : vector<1x8x96xbf16> to vector<8x96xbf16>
    %41 = arith.extf %40 : vector<8x96xbf16> to vector<8x96xf32>
    %cst_14 = arith.constant dense<0.000000e+00> : vector<8x96xf32>
    %42 = tpu.matmul %32, %0, %cst_14 {dimension_numbers = #tpu.dot_dimension_numbers<[1], [0], [0], [1], [0, 0, 1, 1], [], []>} : vector<8x32xf32>, vector<32x96xf32>, vector<8x96xf32> -> vector<8x96xf32>
    %43 = arith.addf %41, %42 : vector<8x96xf32>
    %44 = vector.extract_strided_slice %43 {offsets = [0, 0], sizes = [8, 32], strides = [1, 1]} : vector<8x96xf32> to vector<8x32xf32>
    %45 = arith.negf %44 : vector<8x32xf32>
    %46 = math.exp %45 : vector<8x32xf32>
    %cst_15 = arith.constant 1.000000e+00 : f32
    %47 = vector.broadcast %cst_15 : f32 to vector<8x32xf32>
    %48 = arith.addf %47, %46 : vector<8x32xf32>
    %49 = arith.divf %47, %48 : vector<8x32xf32>
    %50 = vector.extract_strided_slice %43 {offsets = [0, 32], sizes = [8, 32], strides = [1, 1]} : vector<8x96xf32> to vector<8x32xf32>
    %51 = arith.negf %50 : vector<8x32xf32>
    %52 = math.exp %51 : vector<8x32xf32>
    %cst_16 = arith.constant 1.000000e+00 : f32
    %53 = vector.broadcast %cst_16 : f32 to vector<8x32xf32>
    %54 = arith.addf %53, %52 : vector<8x32xf32>
    %55 = arith.divf %53, %54 : vector<8x32xf32>
    %56 = vector.extract_strided_slice %41 {offsets = [0, 64], sizes = [8, 32], strides = [1, 1]} : vector<8x96xf32> to vector<8x32xf32>
    %57 = vector.extract_strided_slice %42 {offsets = [0, 64], sizes = [8, 32], strides = [1, 1]} : vector<8x96xf32> to vector<8x32xf32>
    %58 = vector.broadcast %1 : vector<1x32xf32> to vector<8x32xf32>
    %59 = arith.addf %57, %58 : vector<8x32xf32>
    %60 = arith.mulf %49, %59 : vector<8x32xf32>
    %61 = arith.addf %56, %60 : vector<8x32xf32>
    %62 = math.tanh %61 : vector<8x32xf32>
    %cst_17 = arith.constant 1.000000e+00 : f32
    %63 = vector.broadcast %cst_17 : f32 to vector<8x32xf32>
    %64 = arith.subf %63, %55 : vector<8x32xf32>
    %65 = arith.mulf %64, %62 : vector<8x32xf32>
    %66 = arith.mulf %55, %32 : vector<8x32xf32>
    %67 = arith.addf %65, %66 : vector<8x32xf32>
    %68 = arith.truncf %67 : vector<8x32xf32> to vector<8x32xbf16>
    %69 = arith.index_cast %c1_i32 : i32 to index
    %c0_18 = arith.constant 0 : index
    %c0_19 = arith.constant 0 : index
    %70 = vector.load %arg4[%69, %c0_18, %c0_19] : memref<8x8x32xbf16, #tpu.memory_space<vmem>>, vector<1x8x32xbf16>
    %71 = vector.shape_cast %70 : vector<1x8x32xbf16> to vector<8x32xbf16>
    %72 = vector.shape_cast %68 : vector<8x32xbf16> to vector<1x8x32xbf16>
    tpu.vector_store %arg4[%69, %c0_18, %c0_19], %72 {strides = array<i32>} : memref<8x8x32xbf16, #tpu.memory_space<vmem>>, vector<1x8x32xbf16>,
    %c2_i32 = arith.constant 2 : i32
    %73 = arith.index_cast %c2_i32 : i32 to index
    %c0_20 = arith.constant 0 : index
    %c0_21 = arith.constant 0 : index
    %74 = vector.load %arg0[%73, %c0_20, %c0_21] : memref<8x8x96xbf16, #tpu.memory_space<vmem>>, vector<1x8x96xbf16>
    %75 = vector.shape_cast %74 : vector<1x8x96xbf16> to vector<8x96xbf16>
    %76 = arith.extf %75 : vector<8x96xbf16> to vector<8x96xf32>
    %cst_22 = arith.constant dense<0.000000e+00> : vector<8x96xf32>
    %77 = tpu.matmul %67, %0, %cst_22 {dimension_numbers = #tpu.dot_dimension_numbers<[1], [0], [0], [1], [0, 0, 1, 1], [], []>} : vector<8x32xf32>, vector<32x96xf32>, vector<8x96xf32> -> vector<8x96xf32>
    %78 = arith.addf %76, %77 : vector<8x96xf32>
    %79 = vector.extract_strided_slice %78 {offsets = [0, 0], sizes = [8, 32], strides = [1, 1]} : vector<8x96xf32> to vector<8x32xf32>
    %80 = arith.negf %79 : vector<8x32xf32>
    %81 = math.exp %80 : vector<8x32xf32>
    %cst_23 = arith.constant 1.000000e+00 : f32
    %82 = vector.broadcast %cst_23 : f32 to vector<8x32xf32>
    %83 = arith.addf %82, %81 : vector<8x32xf32>
    %84 = arith.divf %82, %83 : vector<8x32xf32>
    %85 = vector.extract_strided_slice %78 {offsets = [0, 32], sizes = [8, 32], strides = [1, 1]} : vector<8x96xf32> to vector<8x32xf32>
    %86 = arith.negf %85 : vector<8x32xf32>
    %87 = math.exp %86 : vector<8x32xf32>
    %cst_24 = arith.constant 1.000000e+00 : f32
    %88 = vector.broadcast %cst_24 : f32 to vector<8x32xf32>
    %89 = arith.addf %88, %87 : vector<8x32xf32>
    %90 = arith.divf %88, %89 : vector<8x32xf32>
    %91 = vector.extract_strided_slice %76 {offsets = [0, 64], sizes = [8, 32], strides = [1, 1]} : vector<8x96xf32> to vector<8x32xf32>
    %92 = vector.extract_strided_slice %77 {offsets = [0, 64], sizes = [8, 32], strides = [1, 1]} : vector<8x96xf32> to vector<8x32xf32>
    %93 = vector.broadcast %1 : vector<1x32xf32> to vector<8x32xf32>
    %94 = arith.addf %92, %93 : vector<8x32xf32>
    %95 = arith.mulf %84, %94 : vector<8x32xf32>
    %96 = arith.addf %91, %95 : vector<8x32xf32>
    %97 = math.tanh %96 : vector<8x32xf32>
    %cst_25 = arith.constant 1.000000e+00 : f32
    %98 = vector.broadcast %cst_25 : f32 to vector<8x32xf32>
    %99 = arith.subf %98, %90 : vector<8x32xf32>
    %100 = arith.mulf %99, %97 : vector<8x32xf32>
    %101 = arith.mulf %90, %67 : vector<8x32xf32>
    %102 = arith.addf %100, %101 : vector<8x32xf32>
    %103 = arith.truncf %102 : vector<8x32xf32> to vector<8x32xbf16>
    %104 = arith.index_cast %c2_i32 : i32 to index
    %c0_26 = arith.constant 0 : index
    %c0_27 = arith.constant 0 : index
    %105 = vector.load %arg4[%104, %c0_26, %c0_27] : memref<8x8x32xbf16, #tpu.memory_space<vmem>>, vector<1x8x32xbf16>
    %106 = vector.shape_cast %105 : vector<1x8x32xbf16> to vector<8x32xbf16>
    %107 = vector.shape_cast %103 : vector<8x32xbf16> to vector<1x8x32xbf16>
    tpu.vector_store %arg4[%104, %c0_26, %c0_27], %107 {strides = array<i32>} : memref<8x8x32xbf16, #tpu.memory_space<vmem>>, vector<1x8x32xbf16>,
    %c3_i32 = arith.constant 3 : i32
    %108 = arith.index_cast %c3_i32 : i32 to index
    %c0_28 = arith.constant 0 : index
    %c0_29 = arith.constant 0 : index
    %109 = vector.load %arg0[%108, %c0_28, %c0_29] : memref<8x8x96xbf16, #tpu.memory_space<vmem>>, vector<1x8x96xbf16>
    %110 = vector.shape_cast %109 : vector<1x8x96xbf16> to vector<8x96xbf16>
    %111 = arith.extf %110 : vector<8x96xbf16> to vector<8x96xf32>
    %cst_30 = arith.constant dense<0.000000e+00> : vector<8x96xf32>
    %112 = tpu.matmul %102, %0, %cst_30 {dimension_numbers = #tpu.dot_dimension_numbers<[1], [0], [0], [1], [0, 0, 1, 1], [], []>} : vector<8x32xf32>, vector<32x96xf32>, vector<8x96xf32> -> vector<8x96xf32>
    %113 = arith.addf %111, %112 : vector<8x96xf32>
    %114 = vector.extract_strided_slice %113 {offsets = [0, 0], sizes = [8, 32], strides = [1, 1]} : vector<8x96xf32> to vector<8x32xf32>
    %115 = arith.negf %114 : vector<8x32xf32>
    %116 = math.exp %115 : vector<8x32xf32>
    %cst_31 = arith.constant 1.000000e+00 : f32
    %117 = vector.broadcast %cst_31 : f32 to vector<8x32xf32>
    %118 = arith.addf %117, %116 : vector<8x32xf32>
    %119 = arith.divf %117, %118 : vector<8x32xf32>
    %120 = vector.extract_strided_slice %113 {offsets = [0, 32], sizes = [8, 32], strides = [1, 1]} : vector<8x96xf32> to vector<8x32xf32>
    %121 = arith.negf %120 : vector<8x32xf32>
    %122 = math.exp %121 : vector<8x32xf32>
    %cst_32 = arith.constant 1.000000e+00 : f32
    %123 = vector.broadcast %cst_32 : f32 to vector<8x32xf32>
    %124 = arith.addf %123, %122 : vector<8x32xf32>
    %125 = arith.divf %123, %124 : vector<8x32xf32>
    %126 = vector.extract_strided_slice %111 {offsets = [0, 64], sizes = [8, 32], strides = [1, 1]} : vector<8x96xf32> to vector<8x32xf32>
    %127 = vector.extract_strided_slice %112 {offsets = [0, 64], sizes = [8, 32], strides = [1, 1]} : vector<8x96xf32> to vector<8x32xf32>
    %128 = vector.broadcast %1 : vector<1x32xf32> to vector<8x32xf32>
    %129 = arith.addf %127, %128 : vector<8x32xf32>
    %130 = arith.mulf %119, %129 : vector<8x32xf32>
    %131 = arith.addf %126, %130 : vector<8x32xf32>
    %132 = math.tanh %131 : vector<8x32xf32>
    %cst_33 = arith.constant 1.000000e+00 : f32
    %133 = vector.broadcast %cst_33 : f32 to vector<8x32xf32>
    %134 = arith.subf %133, %125 : vector<8x32xf32>
    %135 = arith.mulf %134, %132 : vector<8x32xf32>
    %136 = arith.mulf %125, %102 : vector<8x32xf32>
    %137 = arith.addf %135, %136 : vector<8x32xf32>
    %138 = arith.truncf %137 : vector<8x32xf32> to vector<8x32xbf16>
    %139 = arith.index_cast %c3_i32 : i32 to index
    %c0_34 = arith.constant 0 : index
    %c0_35 = arith.constant 0 : index
    %140 = vector.load %arg4[%139, %c0_34, %c0_35] : memref<8x8x32xbf16, #tpu.memory_space<vmem>>, vector<1x8x32xbf16>
    %141 = vector.shape_cast %140 : vector<1x8x32xbf16> to vector<8x32xbf16>
    %142 = vector.shape_cast %138 : vector<8x32xbf16> to vector<1x8x32xbf16>
    tpu.vector_store %arg4[%139, %c0_34, %c0_35], %142 {strides = array<i32>} : memref<8x8x32xbf16, #tpu.memory_space<vmem>>, vector<1x8x32xbf16>,
    %c4_i32 = arith.constant 4 : i32
    %143 = arith.index_cast %c4_i32 : i32 to index
    %c0_36 = arith.constant 0 : index
    %c0_37 = arith.constant 0 : index
    %144 = vector.load %arg0[%143, %c0_36, %c0_37] : memref<8x8x96xbf16, #tpu.memory_space<vmem>>, vector<1x8x96xbf16>
    %145 = vector.shape_cast %144 : vector<1x8x96xbf16> to vector<8x96xbf16>
    %146 = arith.extf %145 : vector<8x96xbf16> to vector<8x96xf32>
    %cst_38 = arith.constant dense<0.000000e+00> : vector<8x96xf32>
    %147 = tpu.matmul %137, %0, %cst_38 {dimension_numbers = #tpu.dot_dimension_numbers<[1], [0], [0], [1], [0, 0, 1, 1], [], []>} : vector<8x32xf32>, vector<32x96xf32>, vector<8x96xf32> -> vector<8x96xf32>
    %148 = arith.addf %146, %147 : vector<8x96xf32>
    %149 = vector.extract_strided_slice %148 {offsets = [0, 0], sizes = [8, 32], strides = [1, 1]} : vector<8x96xf32> to vector<8x32xf32>
    %150 = arith.negf %149 : vector<8x32xf32>
    %151 = math.exp %150 : vector<8x32xf32>
    %cst_39 = arith.constant 1.000000e+00 : f32
    %152 = vector.broadcast %cst_39 : f32 to vector<8x32xf32>
    %153 = arith.addf %152, %151 : vector<8x32xf32>
    %154 = arith.divf %152, %153 : vector<8x32xf32>
    %155 = vector.extract_strided_slice %148 {offsets = [0, 32], sizes = [8, 32], strides = [1, 1]} : vector<8x96xf32> to vector<8x32xf32>
    %156 = arith.negf %155 : vector<8x32xf32>
    %157 = math.exp %156 : vector<8x32xf32>
    %cst_40 = arith.constant 1.000000e+00 : f32
    %158 = vector.broadcast %cst_40 : f32 to vector<8x32xf32>
    %159 = arith.addf %158, %157 : vector<8x32xf32>
    %160 = arith.divf %158, %159 : vector<8x32xf32>
    %161 = vector.extract_strided_slice %146 {offsets = [0, 64], sizes = [8, 32], strides = [1, 1]} : vector<8x96xf32> to vector<8x32xf32>
    %162 = vector.extract_strided_slice %147 {offsets = [0, 64], sizes = [8, 32], strides = [1, 1]} : vector<8x96xf32> to vector<8x32xf32>
    %163 = vector.broadcast %1 : vector<1x32xf32> to vector<8x32xf32>
    %164 = arith.addf %162, %163 : vector<8x32xf32>
    %165 = arith.mulf %154, %164 : vector<8x32xf32>
    %166 = arith.addf %161, %165 : vector<8x32xf32>
    %167 = math.tanh %166 : vector<8x32xf32>
    %cst_41 = arith.constant 1.000000e+00 : f32
    %168 = vector.broadcast %cst_41 : f32 to vector<8x32xf32>
    %169 = arith.subf %168, %160 : vector<8x32xf32>
    %170 = arith.mulf %169, %167 : vector<8x32xf32>
    %171 = arith.mulf %160, %137 : vector<8x32xf32>
    %172 = arith.addf %170, %171 : vector<8x32xf32>
    %173 = arith.truncf %172 : vector<8x32xf32> to vector<8x32xbf16>
    %174 = arith.index_cast %c4_i32 : i32 to index
    %c0_42 = arith.constant 0 : index
    %c0_43 = arith.constant 0 : index
    %175 = vector.load %arg4[%174, %c0_42, %c0_43] : memref<8x8x32xbf16, #tpu.memory_space<vmem>>, vector<1x8x32xbf16>
    %176 = vector.shape_cast %175 : vector<1x8x32xbf16> to vector<8x32xbf16>
    %177 = vector.shape_cast %173 : vector<8x32xbf16> to vector<1x8x32xbf16>
    tpu.vector_store %arg4[%174, %c0_42, %c0_43], %177 {strides = array<i32>} : memref<8x8x32xbf16, #tpu.memory_space<vmem>>, vector<1x8x32xbf16>,
    %c5_i32 = arith.constant 5 : i32
    %178 = arith.index_cast %c5_i32 : i32 to index
    %c0_44 = arith.constant 0 : index
    %c0_45 = arith.constant 0 : index
    %179 = vector.load %arg0[%178, %c0_44, %c0_45] : memref<8x8x96xbf16, #tpu.memory_space<vmem>>, vector<1x8x96xbf16>
    %180 = vector.shape_cast %179 : vector<1x8x96xbf16> to vector<8x96xbf16>
    %181 = arith.extf %180 : vector<8x96xbf16> to vector<8x96xf32>
    %cst_46 = arith.constant dense<0.000000e+00> : vector<8x96xf32>
    %182 = tpu.matmul %172, %0, %cst_46 {dimension_numbers = #tpu.dot_dimension_numbers<[1], [0], [0], [1], [0, 0, 1, 1], [], []>} : vector<8x32xf32>, vector<32x96xf32>, vector<8x96xf32> -> vector<8x96xf32>
    %183 = arith.addf %181, %182 : vector<8x96xf32>
    %184 = vector.extract_strided_slice %183 {offsets = [0, 0], sizes = [8, 32], strides = [1, 1]} : vector<8x96xf32> to vector<8x32xf32>
    %185 = arith.negf %184 : vector<8x32xf32>
    %186 = math.exp %185 : vector<8x32xf32>
    %cst_47 = arith.constant 1.000000e+00 : f32
    %187 = vector.broadcast %cst_47 : f32 to vector<8x32xf32>
    %188 = arith.addf %187, %186 : vector<8x32xf32>
    %189 = arith.divf %187, %188 : vector<8x32xf32>
    %190 = vector.extract_strided_slice %183 {offsets = [0, 32], sizes = [8, 32], strides = [1, 1]} : vector<8x96xf32> to vector<8x32xf32>
    %191 = arith.negf %190 : vector<8x32xf32>
    %192 = math.exp %191 : vector<8x32xf32>
    %cst_48 = arith.constant 1.000000e+00 : f32
    %193 = vector.broadcast %cst_48 : f32 to vector<8x32xf32>
    %194 = arith.addf %193, %192 : vector<8x32xf32>
    %195 = arith.divf %193, %194 : vector<8x32xf32>
    %196 = vector.extract_strided_slice %181 {offsets = [0, 64], sizes = [8, 32], strides = [1, 1]} : vector<8x96xf32> to vector<8x32xf32>
    %197 = vector.extract_strided_slice %182 {offsets = [0, 64], sizes = [8, 32], strides = [1, 1]} : vector<8x96xf32> to vector<8x32xf32>
    %198 = vector.broadcast %1 : vector<1x32xf32> to vector<8x32xf32>
    %199 = arith.addf %197, %198 : vector<8x32xf32>
    %200 = arith.mulf %189, %199 : vector<8x32xf32>
    %201 = arith.addf %196, %200 : vector<8x32xf32>
    %202 = math.tanh %201 : vector<8x32xf32>
    %cst_49 = arith.constant 1.000000e+00 : f32
    %203 = vector.broadcast %cst_49 : f32 to vector<8x32xf32>
    %204 = arith.subf %203, %195 : vector<8x32xf32>
    %205 = arith.mulf %204, %202 : vector<8x32xf32>
    %206 = arith.mulf %195, %172 : vector<8x32xf32>
    %207 = arith.addf %205, %206 : vector<8x32xf32>
    %208 = arith.truncf %207 : vector<8x32xf32> to vector<8x32xbf16>
    %209 = arith.index_cast %c5_i32 : i32 to index
    %c0_50 = arith.constant 0 : index
    %c0_51 = arith.constant 0 : index
    %210 = vector.load %arg4[%209, %c0_50, %c0_51] : memref<8x8x32xbf16, #tpu.memory_space<vmem>>, vector<1x8x32xbf16>
    %211 = vector.shape_cast %210 : vector<1x8x32xbf16> to vector<8x32xbf16>
    %212 = vector.shape_cast %208 : vector<8x32xbf16> to vector<1x8x32xbf16>
    tpu.vector_store %arg4[%209, %c0_50, %c0_51], %212 {strides = array<i32>} : memref<8x8x32xbf16, #tpu.memory_space<vmem>>, vector<1x8x32xbf16>,
    %c6_i32 = arith.constant 6 : i32
    %213 = arith.index_cast %c6_i32 : i32 to index
    %c0_52 = arith.constant 0 : index
    %c0_53 = arith.constant 0 : index
    %214 = vector.load %arg0[%213, %c0_52, %c0_53] : memref<8x8x96xbf16, #tpu.memory_space<vmem>>, vector<1x8x96xbf16>
    %215 = vector.shape_cast %214 : vector<1x8x96xbf16> to vector<8x96xbf16>
    %216 = arith.extf %215 : vector<8x96xbf16> to vector<8x96xf32>
    %cst_54 = arith.constant dense<0.000000e+00> : vector<8x96xf32>
    %217 = tpu.matmul %207, %0, %cst_54 {dimension_numbers = #tpu.dot_dimension_numbers<[1], [0], [0], [1], [0, 0, 1, 1], [], []>} : vector<8x32xf32>, vector<32x96xf32>, vector<8x96xf32> -> vector<8x96xf32>
    %218 = arith.addf %216, %217 : vector<8x96xf32>
    %219 = vector.extract_strided_slice %218 {offsets = [0, 0], sizes = [8, 32], strides = [1, 1]} : vector<8x96xf32> to vector<8x32xf32>
    %220 = arith.negf %219 : vector<8x32xf32>
    %221 = math.exp %220 : vector<8x32xf32>
    %cst_55 = arith.constant 1.000000e+00 : f32
    %222 = vector.broadcast %cst_55 : f32 to vector<8x32xf32>
    %223 = arith.addf %222, %221 : vector<8x32xf32>
    %224 = arith.divf %222, %223 : vector<8x32xf32>
    %225 = vector.extract_strided_slice %218 {offsets = [0, 32], sizes = [8, 32], strides = [1, 1]} : vector<8x96xf32> to vector<8x32xf32>
    %226 = arith.negf %225 : vector<8x32xf32>
    %227 = math.exp %226 : vector<8x32xf32>
    %cst_56 = arith.constant 1.000000e+00 : f32
    %228 = vector.broadcast %cst_56 : f32 to vector<8x32xf32>
    %229 = arith.addf %228, %227 : vector<8x32xf32>
    %230 = arith.divf %228, %229 : vector<8x32xf32>
    %231 = vector.extract_strided_slice %216 {offsets = [0, 64], sizes = [8, 32], strides = [1, 1]} : vector<8x96xf32> to vector<8x32xf32>
    %232 = vector.extract_strided_slice %217 {offsets = [0, 64], sizes = [8, 32], strides = [1, 1]} : vector<8x96xf32> to vector<8x32xf32>
    %233 = vector.broadcast %1 : vector<1x32xf32> to vector<8x32xf32>
    %234 = arith.addf %232, %233 : vector<8x32xf32>
    %235 = arith.mulf %224, %234 : vector<8x32xf32>
    %236 = arith.addf %231, %235 : vector<8x32xf32>
    %237 = math.tanh %236 : vector<8x32xf32>
    %cst_57 = arith.constant 1.000000e+00 : f32
    %238 = vector.broadcast %cst_57 : f32 to vector<8x32xf32>
    %239 = arith.subf %238, %230 : vector<8x32xf32>
    %240 = arith.mulf %239, %237 : vector<8x32xf32>
    %241 = arith.mulf %230, %207 : vector<8x32xf32>
    %242 = arith.addf %240, %241 : vector<8x32xf32>
    %243 = arith.truncf %242 : vector<8x32xf32> to vector<8x32xbf16>
    %244 = arith.index_cast %c6_i32 : i32 to index
    %c0_58 = arith.constant 0 : index
    %c0_59 = arith.constant 0 : index
    %245 = vector.load %arg4[%244, %c0_58, %c0_59] : memref<8x8x32xbf16, #tpu.memory_space<vmem>>, vector<1x8x32xbf16>
    %246 = vector.shape_cast %245 : vector<1x8x32xbf16> to vector<8x32xbf16>
    %247 = vector.shape_cast %243 : vector<8x32xbf16> to vector<1x8x32xbf16>
    tpu.vector_store %arg4[%244, %c0_58, %c0_59], %247 {strides = array<i32>} : memref<8x8x32xbf16, #tpu.memory_space<vmem>>, vector<1x8x32xbf16>,
    %c7_i32 = arith.constant 7 : i32
    %248 = arith.index_cast %c7_i32 : i32 to index
    %c0_60 = arith.constant 0 : index
    %c0_61 = arith.constant 0 : index
    %249 = vector.load %arg0[%248, %c0_60, %c0_61] : memref<8x8x96xbf16, #tpu.memory_space<vmem>>, vector<1x8x96xbf16>
    %250 = vector.shape_cast %249 : vector<1x8x96xbf16> to vector<8x96xbf16>
    %251 = arith.extf %250 : vector<8x96xbf16> to vector<8x96xf32>
    %cst_62 = arith.constant dense<0.000000e+00> : vector<8x96xf32>
    %252 = tpu.matmul %242, %0, %cst_62 {dimension_numbers = #tpu.dot_dimension_numbers<[1], [0], [0], [1], [0, 0, 1, 1], [], []>} : vector<8x32xf32>, vector<32x96xf32>, vector<8x96xf32> -> vector<8x96xf32>
    %253 = arith.addf %251, %252 : vector<8x96xf32>
    %254 = vector.extract_strided_slice %253 {offsets = [0, 0], sizes = [8, 32], strides = [1, 1]} : vector<8x96xf32> to vector<8x32xf32>
    %255 = arith.negf %254 : vector<8x32xf32>
    %256 = math.exp %255 : vector<8x32xf32>
    %cst_63 = arith.constant 1.000000e+00 : f32
    %257 = vector.broadcast %cst_63 : f32 to vector<8x32xf32>
    %258 = arith.addf %257, %256 : vector<8x32xf32>
    %259 = arith.divf %257, %258 : vector<8x32xf32>
    %260 = vector.extract_strided_slice %253 {offsets = [0, 32], sizes = [8, 32], strides = [1, 1]} : vector<8x96xf32> to vector<8x32xf32>
    %261 = arith.negf %260 : vector<8x32xf32>
    %262 = math.exp %261 : vector<8x32xf32>
    %cst_64 = arith.constant 1.000000e+00 : f32
    %263 = vector.broadcast %cst_64 : f32 to vector<8x32xf32>
    %264 = arith.addf %263, %262 : vector<8x32xf32>
    %265 = arith.divf %263, %264 : vector<8x32xf32>
    %266 = vector.extract_strided_slice %251 {offsets = [0, 64], sizes = [8, 32], strides = [1, 1]} : vector<8x96xf32> to vector<8x32xf32>
    %267 = vector.extract_strided_slice %252 {offsets = [0, 64], sizes = [8, 32], strides = [1, 1]} : vector<8x96xf32> to vector<8x32xf32>
    %268 = vector.broadcast %1 : vector<1x32xf32> to vector<8x32xf32>
    %269 = arith.addf %267, %268 : vector<8x32xf32>
    %270 = arith.mulf %259, %269 : vector<8x32xf32>
    %271 = arith.addf %266, %270 : vector<8x32xf32>
    %272 = math.tanh %271 : vector<8x32xf32>
    %cst_65 = arith.constant 1.000000e+00 : f32
    %273 = vector.broadcast %cst_65 : f32 to vector<8x32xf32>
    %274 = arith.subf %273, %265 : vector<8x32xf32>
    %275 = arith.mulf %274, %272 : vector<8x32xf32>
    %276 = arith.mulf %265, %242 : vector<8x32xf32>
    %277 = arith.addf %275, %276 : vector<8x32xf32>
    %278 = arith.truncf %277 : vector<8x32xf32> to vector<8x32xbf16>
    %279 = arith.index_cast %c7_i32 : i32 to index
    %c0_66 = arith.constant 0 : index
    %c0_67 = arith.constant 0 : index
    %280 = vector.load %arg4[%279, %c0_66, %c0_67] : memref<8x8x32xbf16, #tpu.memory_space<vmem>>, vector<1x8x32xbf16>
    %281 = vector.shape_cast %280 : vector<1x8x32xbf16> to vector<8x32xbf16>
    %282 = vector.shape_cast %278 : vector<8x32xbf16> to vector<1x8x32xbf16>
    tpu.vector_store %arg4[%279, %c0_66, %c0_67], %282 {strides = array<i32>} : memref<8x8x32xbf16, #tpu.memory_space<vmem>>, vector<1x8x32xbf16>,
    %c8_i32 = arith.constant 8 : i32
    %c0_68 = arith.constant 0 : index
    %c0_69 = arith.constant 0 : index
    %283 = vector.load %arg5[%c0_68, %c0_69] : memref<8x32xf32, #tpu.memory_space<vmem>>, vector<8x32xf32>
    tpu.vector_store %arg5[%c0_68, %c0_69], %277 {strides = array<i32>} : memref<8x32xf32, #tpu.memory_space<vmem>>, vector<8x32xf32>,
    return
  }
}

</mosaic_0001>

<bundles_post_ra>
// kernel: tpu_custom_call.1
= control target key start
LH: loop header
LB: loop body
LE: loop exit
PB: predicated region body
PF: predicated region fallthrough
CT: control target
= control target key end

     0   :  { %11 = vsyncpa [#allocation3], 0  ;;  %s1696_s0 = inlined_call_operand.hbm [shape: bf16[8,8,96], index: 0, kind: input, shape index: {}]   ;;  %s1697_s1 = inlined_call_operand.hbm [shape: f32[8,32], index: 1, kind: input, shape index: {}]   ;;  %s1698_s2 = inlined_call_operand.hbm [shape: f32[32,96], index: 2, kind: input, shape index: {}]   ;;  %s1699_s3 = inlined_call_operand.vmem [shape: f32[1,32], index: 3, kind: input, shape index: {}]   ;;  %s1700_s4 = inlined_call_operand.hbm [shape: bf16[8,8,32], index: 4, kind: output, shape index: {0}]   ;;  %s1701_s5 = inlined_call_operand.hbm [shape: f32[8,32], index: 5, kind: output, shape index: {1}]  }
   0x1   :  { %12 = vsyncpa [#allocation6], 0 }
   0x2   :  { %13 = vsyncpa [#allocation4], 0 }
   0x3   :  { %14 = vsyncpa [#allocation10], 0  ;;  %s1413_s18 = smov [#allocation5]   ;;  %s1414_s20 = smov [#allocation2]  }
   0x4   :  { %s33_s19 = sshll.u32 %s1413_s18, 4  ;;  %s20_s21 = sshll.u32 %s1414_s20, 4  ;;  %s34_s19 = int_to_ptr.vmem [resolvable:$true] %s33_s19  ;;  %s1457_s21 = int_to_ptr.vmem [resolvable:$true] %s20_s21 }
   0x5   :  { %s1295_s24 = scalar_lea.hbm %s1697_s1, 128 }
   0x6   :  { %p1296_p0 = scmp.ne.s32.totalorder %s1697_s1, %s1295_s24  ;;  %p1299_p1 = scmp.lt.u32.totalorder %s1295_s24, %s1697_s1 }
   0x8   :  { %p1301_p2 = pnand %p1299_p1, %p1296_p0 }
   0xa   :  { %1304 = shalt.err (!%p1301_p2)
}
   0xb   :  { %s1305_s29 = scalar_lea.vmem %s34_s19, 128  ;;  %p1310_p4 = scmp.lt.s32.totalorder %s34_s19, %s34_s19 }
   0xc   :  { %p1306_p3 = scmp.ne.s32.totalorder %s34_s19, %s1305_s29  ;;  %p1311_p5 = scmp.lt.s32.totalorder %s1305_s29, %s1305_s29 }
   0xe   :  { %p1312_p6 = por %p1311_p5, %p1310_p4 }
  0x10   :  { %p1313_p7 = pnand %p1312_p6, %p1306_p3 }
  0x12   :  { %1316 = shalt.err (!%p1313_p7)
}
  0x13   :  { %36 = dma.hbm_to_vmem [thread:$0]  %s1697_s1, 128, %s34_s19, [#allocation6]  }
  0x14   :  { %s1317_s9 = scalar_lea.hbm %s1696_s0, 512 }
  0x15   :  { %p1318_p8 = scmp.ne.s32.totalorder %s1696_s0, %s1317_s9  ;;  %p1321_p9 = scmp.lt.u32.totalorder %s1317_s9, %s1696_s0 }
  0x17   :  { %p1323_p10 = pnand %p1321_p9, %p1318_p8 }
  0x19   :  { %1326 = shalt.err (!%p1323_p10)
}
  0x1a   :  { %s1327_s14 = scalar_lea.vmem %s1457_s21, 512  ;;  %p1332_p12 = scmp.lt.s32.totalorder %s1457_s21, %s1457_s21 }
  0x1b   :  { %p1328_p11 = scmp.ne.s32.totalorder %s1457_s21, %s1327_s14  ;;  %p1333_p13 = scmp.lt.s32.totalorder %s1327_s14, %s1327_s14 }
  0x1d   :  { %p1334_p0 = por %p1333_p13, %p1332_p12 }
  0x1f   :  { %p1335_p1 = pnand %p1334_p0, %p1328_p11 }
  0x21   :  { %1338 = shalt.err (!%p1335_p1)
}
  0x22   :  { %s1415_s1 = smov 64   ;;  %s1416_s15 = smov 4  }
  0x23   :  { %26 = dma.hbm_to_vmem [thread:$0]  %s1696_s0, 512, %s1457_s21, [#allocation3], %s1415_s1, %s1415_s1, %s1416_s15  }
  0x24   :  { %s1417_s18 = smov [#allocation7]   ;;  %s1339_s23 = scalar_lea.hbm %s1698_s2, 512 }
  0x25   :  { %s42_s19 = sshll.u32 %s1417_s18, 4  ;;  %p1340_p2 = scmp.ne.s32.totalorder %s1698_s2, %s1339_s23  ;;  %s43_s19 = int_to_ptr.vmem [resolvable:$true] %s42_s19 }
  0x26   :  { %p1343_p3 = scmp.lt.u32.totalorder %s1339_s23, %s1698_s2 }
  0x28   :  { %p1345_p4 = pnand %p1343_p3, %p1340_p2 }
  0x2a   :  { %1348 = shalt.err (!%p1345_p4)
}
  0x2b   :  { %s1349_s28 = scalar_lea.vmem %s43_s19, 512  ;;  %p1354_p6 = scmp.lt.s32.totalorder %s43_s19, %s43_s19 }
  0x2c   :  { %p1350_p5 = scmp.ne.s32.totalorder %s43_s19, %s1349_s28  ;;  %p1355_p7 = scmp.lt.s32.totalorder %s1349_s28, %s1349_s28 }
  0x2e   :  { %p1356_p8 = por %p1355_p7, %p1354_p6 }
  0x30   :  { %p1357_p9 = pnand %p1356_p8, %p1350_p5 }
  0x32   :  { %1360 = shalt.err (!%p1357_p9)
}
  0x33   :  { %s1418_s0 = smov 128   ;;  %s1419_s21 = smov 8  }
  0x34   :  { %48 = dma.hbm_to_vmem [thread:$0]  %s1698_s2, 512, %s43_s19, [#allocation6], %s1418_s0, %s1418_s0, %s1419_s21  }
  0x35   :  { %1405 = dma.done.wait [#allocation3], 512  }
  0x36   :  { %1406 = vsyncadd [#allocation3], 4294966784 }
  0x37   :  { %1407 = dma.done.wait [#allocation6], 640  }
  0x38   :  { %1408 = vsyncadd [#allocation6], 4294966656  ;;  %v1420_v0 = vmov 0.0|0.0   ;;  %vm1421_vm0 = vmmov 0   ;;  %v1422_v1 = vmov 0.0   ;;  %v60_v2 = vld [vmem:[#allocation7] sm:$0xff] }
  0x39   :  { %1185 = vmatprep.subr.bf16.mxu0 %v1420_v0  ;;  %1105 = vmatprep.mubr.msk.f32.mxu0 %vm1421_vm0, %v1422_v1  ;;  %v61_v3 = vld [vmem:[#allocation7 + $0x8] sm:$0xff]  ;;  %v62_v4 = vld [vmem:[#allocation7 + $0x10] sm:$0xff]  ;;  %v63_v6 = vld [vmem:[#allocation7 + $0x18] sm:$0xff]  ;;  %vm68_vm1 = vcmask 261120   ;;  %s1424_s7 = smov 96   ;;  %vm187_vm2 = vcmask 257024  }
  0x3a   :  { %1191 = vmatprep.subr.bf16.mxu1 %v1420_v0  ;;  %1116 = vmatprep.mubr.msk.f32.mxu1 %vm1421_vm0, %v1422_v1  ;;  %v1509_v5 = vpack.c.bf16 %v61_v3, %v60_v2  ;;  %v1026_v7 = vld [vmem:[%s1699_s3] ss:$0 sm:$0xff]  ;;  %v1516_v8 = vpack.c.bf16 %v63_v6, %v62_v4  ;;  %s1423_s3 = smov 32   ;;  %v304_v56 = vld [vmem:[#allocation2 + $0x8] sm:$0xff]   ;;  %s1425_s8 = smov [#allocation9]  }
  0x3b   :  { %154 = vrot.lane.b32.xlu0 %v1026_v7, %s1415_s1  ;;  %v65_v9 = vld [vmem:[#allocation5] sm:$0xff]  ;;  %v305_v57 = vunpack.c.l.bf16 %v304_v56  ;;  %s1010_s9 = sshll.u32 %s1425_s8, 4  ;;  %s1426_s10 = smov [#allocation8]   ;;  %s1011_s9 = int_to_ptr.vmem [resolvable:$true] %s1010_s9 }
  0x3c   :  { %1187 = vmatpush3.bf16.msra.mxu0 %v1509_v5  ;;  %1193 = vmatpush3.bf16.msra.mxu1 %v1509_v5  ;;  %v66_v14 = vld [vmem:[#allocation2] sm:$0xff]   ;;  %s997_s11 = sshll.u32 %s1426_s10, 4  ;;  %s1361_s12 = scalar_lea.vmem %s1011_s9, 128  ;;  %s1661_s11 = int_to_ptr.vmem [resolvable:$true] %s997_s11 }
  0x3d   :  { %1188 = vmatprep.subr.bf16.mxu0 %v1420_v0  ;;  %1194 = vmatprep.subr.bf16.mxu1 %v1420_v0  ;;  %v67_v15 = vunpack.c.l.bf16 %v66_v14  ;;  %v191_v36 = vunpack.c.h.bf16 %v66_v14  ;;  %p1362_p10 = scmp.ne.s32.totalorder %s1011_s9, %s1361_s12  ;;  %p1366_p11 = scmp.lt.s32.totalorder %s1011_s9, %s1011_s9 }
  0x3e   :  { %p1367_p12 = scmp.lt.s32.totalorder %s1361_s12, %s1361_s12 }
  0x40   :  { %1190 = vmatpush3.bf16.msra.mxu0 %v1516_v8  ;;  %1196 = vmatpush3.bf16.msra.mxu1 %v1516_v8  ;;  %p1368_p13 = por %p1367_p12, %p1366_p11 }
  0x41   :  { %1197 = vmatprep.subr.bf16.mxu0 %v1420_v0  ;;  %1203 = vmatprep.subr.bf16.mxu1 %v1420_v0 }
  0x42   :  { %p1369_p0 = pnand %p1368_p13, %p1362_p10 }
  0x43   :  { %1106 = vmatmul.mubr.msk.f32.vlgmr.msra.gmra.mrb[0].mxu0 %vm68_vm1, %v65_v9 }
  0x44   :  { %1199 = vmatpush3.bf16.msra.mxu0 %v1509_v5  ;;  %1127 = vmatprep.mubr.msk.f32.mxu0 %vm1421_vm0, %v1422_v1 }
  0x45   :  { %1200 = vmatprep.subr.bf16.mxu0 %v1420_v0 }
  0x48   :  { %1202 = vmatpush3.bf16.msra.mxu0 %v1516_v8 }
  0x49   :  { %1209 = vmatprep.subr.bf16.mxu0 %v1420_v0 }
  0xad   :  { %v1532_v10 = vpop.permute.xlu0 %154 }
 0x116   :  { %v138_v11 = vpop.f32.mrb[0].mxu0 }
 0x117   :  { %v1107_v12 = vpop.f32.mrb[1].mxu0  ;;  %v157_v13 = vadd.f32 %v1532_v10, %v138_v11  ;;  %v142_v16 = vadd.f32 %v138_v11, %v67_v15 }
 0x119   :  { %159 = vrot.lane.b32.xlu0 %v157_v13, %s1415_s1  ;;  %v1025_v17 = vmul.f32 -1.442695, %v142_v16 }
 0x11b   :  { %1247 = vpow2.f32 %v1025_v17 }
 0x11d   :  { %175 = vrot.lane.b32.xlu0 %v65_v9, %s1423_s3 }
 0x125   :  { %v1248_v18 = vpop.eup %1247 }
 0x126   :  { %v146_v19 = vadd.f32 1.0, %v1248_v18  ;;  %v419_v18 = vunpack.c.h.bf16 %v304_v56 }
 0x128   :  { %1249 = vrcp.f32 %v146_v19 }
 0x132   :  { %v1250_v20 = vpop.eup %1249 }
 0x133   :  { %v169_v27 = vsub.f32 1.0, %v1250_v20 }
 0x18b   :  { %v160_v21 = vpop.permute.xlu0 %159 }
 0x18c   :  { %v162_v22 = vmul.f32 %v1250_v20, %v160_v21 }
 0x18e   :  { %164 = vrot.lane.b32.xlu1 %v162_v22, %s1415_s1 }
 0x18f   :  { %v176_v26 = vpop.permute.xlu0 %175 }
 0x190   :  { %v178_v29 = vmul.f32 %v1250_v20, %v176_v26 }
 0x200   :  { %v165_v23 = vpop.permute.xlu1 %164 }
 0x201   :  { %v167_v24 = vadd.f32 %v165_v23, %v67_v15 }
 0x203   :  { %1251 = vtanh.f32 %v167_v24 }
 0x20d   :  { %v1252_v25 = vpop.eup %1251 }
 0x20e   :  { %171 = vrot.lane.b32.xlu1 %v1252_v25, %s1424_s7 }
 0x280   :  { %v172_v28 = vpop.permute.xlu1 %171 }
 0x281   :  { %v174_v30 = vmul.f32 %v172_v28, %v169_v27 }
 0x283   :  { %v1538_v31 = vadd.f32 %v178_v29, %v174_v30 }
 0x285   :  { %193 = vrot.lane.b32.xlu1 %v1538_v31, %s1424_s7 }
 0x2f7   :  { %v194_v32 = vpop.permute.xlu1 %193 }
 0x2f8   :  { %1117 = vmatmul.mubr.msk.f32.vlgmr.msra.gmra.mrb[0].mxu1 %vm68_vm1, %v194_v32 }
 0x2f9   :  { %1205 = vmatpush3.bf16.msra.mxu1 %v1509_v5  ;;  %1138 = vmatprep.mubr.msk.f32.mxu1 %vm1421_vm0, %v1422_v1 }
 0x2fa   :  { %1206 = vmatprep.subr.bf16.mxu1 %v1420_v0 }
 0x2fd   :  { %1208 = vmatpush3.bf16.msra.mxu1 %v1516_v8 }
 0x2fe   :  { %1215 = vmatprep.subr.bf16.mxu1 %v1420_v0 }
 0x3cb   :  { %v263_v33 = vpop.f32.mrb[0].mxu1 }
 0x3cc   :  { %v1118_v34 = vpop.f32.mrb[1].mxu1  ;;  %v274_v35 = vadd.f32 %v263_v33, %v1532_v10  ;;  %v267_v37 = vadd.f32 %v263_v33, %v191_v36 }
 0x3ce   :  { %276 = vrot.lane.b32.xlu0 %v274_v35, %s1415_s1  ;;  %v1029_v38 = vmul.f32 -1.442695, %v267_v37 }
 0x3d0   :  { %1253 = vpow2.f32 %v1029_v38 }
 0x3da   :  { %v1254_v39 = vpop.eup %1253 }
 0x3db   :  { %v271_v40 = vadd.f32 1.0, %v1254_v39  ;;  %v532_v39 = vld [vmem:[#allocation2 + $0x10] sm:$0xff]  }
 0x3dd   :  { %1255 = vrcp.f32 %v271_v40  ;;  %v533_v40 = vunpack.c.l.bf16 %v532_v39 }
 0x3e7   :  { %v1256_v41 = vpop.eup %1255 }
 0x3e8   :  { %v286_v47 = vsub.f32 1.0, %v1256_v41  ;;  %v292_v49 = vmul.f32 %v1256_v41, %v1538_v31 }
 0x440   :  { %v277_v42 = vpop.permute.xlu0 %276 }
 0x441   :  { %v279_v43 = vmul.f32 %v1256_v41, %v277_v42 }
 0x443   :  { %281 = vrot.lane.b32.xlu1 %v279_v43, %s1415_s1 }
 0x4b5   :  { %v282_v44 = vpop.permute.xlu1 %281 }
 0x4b6   :  { %v284_v45 = vadd.f32 %v282_v44, %v191_v36 }
 0x4b8   :  { %1257 = vtanh.f32 %v284_v45 }
 0x4c2   :  { %v1258_v46 = vpop.eup %1257 }
 0x4c3   :  { %288 = vrot.lane.b32.xlu0 %v1258_v46, %s1424_s7 }
 0x535   :  { %v289_v48 = vpop.permute.xlu0 %288 }
 0x536   :  { %v291_v50 = vmul.f32 %v289_v48, %v286_v47 }
 0x538   :  { %v1554_v51 = vadd.f32 %v292_v49, %v291_v50 }
 0x53a   :  { %307 = vrot.lane.b32.xlu1 %v1554_v51, %s1424_s7 }
 0x5ac   :  { %v308_v52 = vpop.permute.xlu1 %307 }
 0x5ad   :  { %1128 = vmatmul.mubr.msk.f32.vlgmr.msra.gmra.mrb[2].mxu0 %vm68_vm1, %v308_v52 }
 0x5ae   :  { %1211 = vmatpush3.bf16.msra.mxu0 %v1509_v5  ;;  %1149 = vmatprep.mubr.msk.f32.mxu0 %vm1421_vm0, %v1422_v1 }
 0x5af   :  { %1212 = vmatprep.subr.bf16.mxu0 %v1420_v0 }
 0x5b2   :  { %1214 = vmatpush3.bf16.msra.mxu0 %v1516_v8 }
 0x5b3   :  { %1221 = vmatprep.subr.bf16.mxu0 %v1420_v0 }
 0x680   :  { %v377_v53 = vpop.f32.mrb[2].mxu0 }
 0x681   :  { %v1129_v54 = vpop.f32.mrb[3].mxu0  ;;  %v388_v55 = vadd.f32 %v377_v53, %v1532_v10  ;;  %v381_v58 = vadd.f32 %v377_v53, %v305_v57 }
 0x683   :  { %390 = vrot.lane.b32.xlu0 %v388_v55, %s1415_s1  ;;  %v1032_v59 = vmul.f32 -1.442695, %v381_v58 }
 0x685   :  { %1259 = vpow2.f32 %v1032_v59 }
 0x68f   :  { %v1260_v60 = vpop.eup %1259 }
 0x690   :  { %v385_v61 = vadd.f32 1.0, %v1260_v60 }
 0x692   :  { %1261 = vrcp.f32 %v385_v61  ;;  %v647_v61 = vunpack.c.h.bf16 %v532_v39 }
 0x69c   :  { %v1262_v62 = vpop.eup %1261 }
 0x69d   :  { %v400_v7 = vsub.f32 1.0, %v1262_v62  ;;  %v406_v11 = vmul.f32 %v1262_v62, %v1554_v51 }
 0x6f5   :  { %v391_v63 = vpop.permute.xlu0 %390 }
 0x6f6   :  { %v393_v2 = vmul.f32 %v1262_v62, %v391_v63 }
 0x6f8   :  { %395 = vrot.lane.b32.xlu1 %v393_v2, %s1415_s1 }
 0x76a   :  { %v396_v3 = vpop.permute.xlu1 %395 }
 0x76b   :  { %v398_v4 = vadd.f32 %v396_v3, %v305_v57 }
 0x76d   :  { %1263 = vtanh.f32 %v398_v4 }
 0x777   :  { %v1264_v6 = vpop.eup %1263 }
 0x778   :  { %402 = vrot.lane.b32.xlu0 %v1264_v6, %s1424_s7 }
 0x7ea   :  { %v403_v9 = vpop.permute.xlu0 %402 }
 0x7eb   :  { %v405_v12 = vmul.f32 %v403_v9, %v400_v7 }
 0x7ed   :  { %v1570_v13 = vadd.f32 %v406_v11, %v405_v12 }
 0x7ef   :  { %421 = vrot.lane.b32.xlu1 %v1570_v13, %s1424_s7 }
 0x861   :  { %v422_v14 = vpop.permute.xlu1 %421 }
 0x862   :  { %1139 = vmatmul.mubr.msk.f32.vlgmr.msra.gmra.mrb[2].mxu1 %vm68_vm1, %v422_v14 }
 0x863   :  { %1217 = vmatpush3.bf16.msra.mxu1 %v1509_v5  ;;  %1160 = vmatprep.mubr.msk.f32.mxu1 %vm1421_vm0, %v1422_v1 }
 0x864   :  { %1218 = vmatprep.subr.bf16.mxu1 %v1420_v0 }
 0x867   :  { %1220 = vmatpush3.bf16.msra.mxu1 %v1516_v8 }
 0x868   :  { %1227 = vmatprep.subr.bf16.mxu1 %v1420_v0 }
 0x935   :  { %v491_v15 = vpop.f32.mrb[2].mxu1 }
 0x936   :  { %v1140_v16 = vpop.f32.mrb[3].mxu1  ;;  %v502_v17 = vadd.f32 %v491_v15, %v1532_v10  ;;  %v495_v19 = vadd.f32 %v491_v15, %v419_v18 }
 0x938   :  { %504 = vrot.lane.b32.xlu0 %v502_v17, %s1415_s1  ;;  %v1035_v20 = vmul.f32 -1.442695, %v495_v19  ;;  %v760_v19 = vld [vmem:[#allocation2 + $0x18] sm:$0xff]  }
 0x93a   :  { %1265 = vpow2.f32 %v1035_v20  ;;  %v761_v20 = vunpack.c.l.bf16 %v760_v19 }
 0x944   :  { %v1266_v21 = vpop.eup %1265 }
 0x945   :  { %v499_v22 = vadd.f32 1.0, %v1266_v21 }
 0x947   :  { %1267 = vrcp.f32 %v499_v22 }
 0x951   :  { %v1268_v23 = vpop.eup %1267 }
 0x952   :  { %v514_v29 = vsub.f32 1.0, %v1268_v23  ;;  %v520_v32 = vmul.f32 %v1268_v23, %v1570_v13 }
 0x9aa   :  { %v505_v24 = vpop.permute.xlu0 %504 }
 0x9ab   :  { %v507_v25 = vmul.f32 %v1268_v23, %v505_v24 }
 0x9ad   :  { %509 = vrot.lane.b32.xlu1 %v507_v25, %s1415_s1 }
 0xa1f   :  { %v510_v26 = vpop.permute.xlu1 %509 }
 0xa20   :  { %v512_v27 = vadd.f32 %v510_v26, %v419_v18 }
 0xa22   :  { %1269 = vtanh.f32 %v512_v27 }
 0xa2c   :  { %v1270_v28 = vpop.eup %1269 }
 0xa2d   :  { %516 = vrot.lane.b32.xlu0 %v1270_v28, %s1424_s7 }
 0xa9f   :  { %v517_v30 = vpop.permute.xlu0 %516 }
 0xaa0   :  { %v519_v33 = vmul.f32 %v517_v30, %v514_v29 }
 0xaa2   :  { %v1586_v34 = vadd.f32 %v520_v32, %v519_v33 }
 0xaa4   :  { %535 = vrot.lane.b32.xlu1 %v1586_v34, %s1424_s7 }
 0xb16   :  { %v536_v35 = vpop.permute.xlu1 %535 }
 0xb17   :  { %1150 = vmatmul.mubr.msk.f32.vlgmr.msra.gmra.mrb[4].mxu0 %vm68_vm1, %v536_v35 }
 0xb18   :  { %1223 = vmatpush3.bf16.msra.mxu0 %v1509_v5  ;;  %1171 = vmatprep.mubr.msk.f32.mxu0 %vm1421_vm0, %v1422_v1 }
 0xb19   :  { %1224 = vmatprep.subr.bf16.mxu0 %v1420_v0 }
 0xb1c   :  { %1226 = vmatpush3.bf16.msra.mxu0 %v1516_v8 }
 0xbea   :  { %v605_v36 = vpop.f32.mrb[4].mxu0 }
 0xbeb   :  { %v1151_v37 = vpop.f32.mrb[5].mxu0  ;;  %v616_v38 = vadd.f32 %v605_v36, %v1532_v10  ;;  %v609_v41 = vadd.f32 %v605_v36, %v533_v40 }
 0xbed   :  { %618 = vrot.lane.b32.xlu0 %v616_v38, %s1415_s1  ;;  %v1038_v42 = vmul.f32 -1.442695, %v609_v41 }
 0xbef   :  { %1271 = vpow2.f32 %v1038_v42  ;;  %v875_v42 = vunpack.c.h.bf16 %v760_v19 }
 0xbf9   :  { %v1272_v43 = vpop.eup %1271 }
 0xbfa   :  { %v613_v44 = vadd.f32 1.0, %v1272_v43 }
 0xbfc   :  { %1273 = vrcp.f32 %v613_v44 }
 0xc06   :  { %v1274_v45 = vpop.eup %1273 }
 0xc07   :  { %v628_v52 = vsub.f32 1.0, %v1274_v45  ;;  %v634_v54 = vmul.f32 %v1274_v45, %v1586_v34 }
 0xc5f   :  { %v619_v46 = vpop.permute.xlu0 %618 }
 0xc60   :  { %v621_v47 = vmul.f32 %v1274_v45, %v619_v46 }
 0xc62   :  { %623 = vrot.lane.b32.xlu1 %v621_v47, %s1415_s1 }
 0xcd4   :  { %v624_v48 = vpop.permute.xlu1 %623 }
 0xcd5   :  { %v626_v49 = vadd.f32 %v624_v48, %v533_v40 }
 0xcd7   :  { %1275 = vtanh.f32 %v626_v49 }
 0xce1   :  { %v1276_v50 = vpop.eup %1275 }
 0xce2   :  { %630 = vrot.lane.b32.xlu0 %v1276_v50, %s1424_s7  ;;  %v1049_v50 = vpack.c.bf16 %v1538_v31, %v1538_v31 }
 0xd54   :  { %v631_v53 = vpop.permute.xlu0 %630 }
 0xd55   :  { %v633_v55 = vmul.f32 %v631_v53, %v628_v52 }
 0xd57   :  { %v1601_v56 = vadd.f32 %v634_v54, %v633_v55 }
 0xd59   :  { %649 = vrot.lane.b32.xlu1 %v1601_v56, %s1424_s7  ;;  %v1053_v52 = vpack.c.bf16 %v1601_v56, %v1601_v56 }
 0xdcb   :  { %v650_v57 = vpop.permute.xlu1 %649 }
 0xdcc   :  { %1161 = vmatmul.mubr.msk.f32.vlgmr.msra.gmra.mrb[4].mxu1 %vm68_vm1, %v650_v57 }
 0xdcd   :  { %1229 = vmatpush3.bf16.msra.mxu1 %v1509_v5  ;;  %1182 = vmatprep.mubr.msk.f32.mxu1 %vm1421_vm0, %v1422_v1 }
 0xdce   :  { %1230 = vmatprep.subr.bf16.mxu1 %v1420_v0 }
 0xdd1   :  { %1232 = vmatpush3.bf16.msra.mxu1 %v1516_v8 }
 0xe9f   :  { %v719_v58 = vpop.f32.mrb[4].mxu1 }
 0xea0   :  { %v1162_v59 = vpop.f32.mrb[5].mxu1  ;;  %v730_v60 = vadd.f32 %v719_v58, %v1532_v10  ;;  %v723_v62 = vadd.f32 %v719_v58, %v647_v61 }
 0xea1   :  { %v1050_v59 = vpack.c.bf16 %v1554_v51, %v1554_v51 }
 0xea2   :  { %732 = vrot.lane.b32.xlu0 %v730_v60, %s1415_s1  ;;  %v1041_v63 = vmul.f32 -1.442695, %v723_v62  ;;  %v1052_v60 = vpack.c.bf16 %v1586_v34, %v1586_v34 }
 0xea4   :  { %1277 = vpow2.f32 %v1041_v63 }
 0xeae   :  { %v1278_v2 = vpop.eup %1277 }
 0xeaf   :  { %v727_v3 = vadd.f32 1.0, %v1278_v2 }
 0xeb1   :  { %1279 = vrcp.f32 %v727_v3 }
 0xebb   :  { %v1280_v5 = vpop.eup %1279 }
 0xebc   :  { %v742_v7 = vsub.f32 1.0, %v1280_v5  ;;  %v748_v11 = vmul.f32 %v1280_v5, %v1601_v56 }
 0xf14   :  { %v733_v4 = vpop.permute.xlu0 %732 }
 0xf15   :  { %v735_v1 = vmul.f32 %v1280_v5, %v733_v4 }
 0xf17   :  { %737 = vrot.lane.b32.xlu1 %v735_v1, %s1415_s1 }
 0xf89   :  { %v738_v0 = vpop.permute.xlu1 %737 }
 0xf8a   :  { %v740_v8 = vadd.f32 %v738_v0, %v647_v61 }
 0xf8c   :  { %1281 = vtanh.f32 %v740_v8 }
 0xf96   :  { %v1282_v6 = vpop.eup %1281 }
 0xf97   :  { %744 = vrot.lane.b32.xlu0 %v1282_v6, %s1424_s7 }
0x1009   :  { %v745_v9 = vpop.permute.xlu0 %744 }
0x100a   :  { %v747_v12 = vmul.f32 %v745_v9, %v742_v7 }
0x100c   :  { %v1616_v14 = vadd.f32 %v748_v11, %v747_v12 }
0x100e   :  { %763 = vrot.lane.b32.xlu1 %v1616_v14, %s1424_s7  ;;  %v1054_v61 = vpack.c.bf16 %v1616_v14, %v1616_v14 }
0x1080   :  { %v764_v15 = vpop.permute.xlu1 %763 }
0x1081   :  { %1172 = vmatmul.mubr.msk.f32.vlgmr.msra.gmra.mrb[6].mxu0 %vm68_vm1, %v764_v15 }
0x1154   :  { %v833_v16 = vpop.f32.mrb[6].mxu0 }
0x1155   :  { %v1173_v17 = vpop.f32.mrb[7].mxu0  ;;  %v844_v18 = vadd.f32 %v833_v16, %v1532_v10  ;;  %v837_v21 = vadd.f32 %v833_v16, %v761_v20 }
0x1157   :  { %846 = vrot.lane.b32.xlu0 %v844_v18, %s1415_s1  ;;  %v1044_v22 = vmul.f32 -1.442695, %v837_v21 }
0x1159   :  { %1283 = vpow2.f32 %v1044_v22 }
0x1163   :  { %v1284_v23 = vpop.eup %1283 }
0x1164   :  { %v841_v24 = vadd.f32 1.0, %v1284_v23 }
0x1166   :  { %1285 = vrcp.f32 %v841_v24 }
0x1170   :  { %v1286_v25 = vpop.eup %1285 }
0x1171   :  { %v856_v32 = vsub.f32 1.0, %v1286_v25  ;;  %v862_v35 = vmul.f32 %v1286_v25, %v1616_v14 }
0x11c9   :  { %v847_v26 = vpop.permute.xlu0 %846 }
0x11ca   :  { %v849_v27 = vmul.f32 %v1286_v25, %v847_v26 }
0x11cc   :  { %851 = vrot.lane.b32.xlu1 %v849_v27, %s1415_s1 }
0x123e   :  { %v852_v28 = vpop.permute.xlu1 %851 }
0x123f   :  { %v854_v29 = vadd.f32 %v852_v28, %v761_v20 }
0x1241   :  { %1287 = vtanh.f32 %v854_v29 }
0x124b   :  { %v1288_v30 = vpop.eup %1287 }
0x124c   :  { %858 = vrot.lane.b32.xlu0 %v1288_v30, %s1424_s7 }
0x12be   :  { %v859_v33 = vpop.permute.xlu0 %858 }
0x12bf   :  { %v861_v36 = vmul.f32 %v859_v33, %v856_v32 }
0x12c1   :  { %v863_v37 = vadd.f32 %v862_v35, %v861_v36 }
0x12c3   :  { %877 = vrot.lane.b32.xlu1 %v863_v37, %s1424_s7  ;;  %v1055_v53 = vpack.c.bf16 %v863_v37, %v863_v37 }
0x1335   :  { %v878_v38 = vpop.permute.xlu1 %877 }
0x1336   :  { %1183 = vmatmul.mubr.msk.f32.vlgmr.msra.gmra.mrb[6].mxu1 %vm68_vm1, %v878_v38 }
0x1409   :  { %v947_v39 = vpop.f32.mrb[6].mxu1 }
0x140a   :  { %v1184_v40 = vpop.f32.mrb[7].mxu1  ;;  %v958_v41 = vadd.f32 %v947_v39, %v1532_v10  ;;  %v951_v43 = vadd.f32 %v947_v39, %v875_v42  ;;  %v1051_v10 = vpack.c.bf16 %v1570_v13, %v1570_v13 }
0x140c   :  { %960 = vrot.lane.b32.xlu0 %v958_v41, %s1415_s1  ;;  %v1047_v44 = vmul.f32 -1.442695, %v951_v43 }
0x140e   :  { %1289 = vpow2.f32 %v1047_v44 }
0x1418   :  { %v1290_v45 = vpop.eup %1289 }
0x1419   :  { %v955_v46 = vadd.f32 1.0, %v1290_v45 }
0x141b   :  { %1291 = vrcp.f32 %v955_v46 }
0x1425   :  { %v1292_v47 = vpop.eup %1291 }
0x1426   :  { %v970_v62 = vsub.f32 1.0, %v1292_v47  ;;  %v976_v2 = vmul.f32 %v1292_v47, %v863_v37 }
0x147e   :  { %v961_v48 = vpop.permute.xlu0 %960 }
0x147f   :  { %v963_v49 = vmul.f32 %v1292_v47, %v961_v48 }
0x1481   :  { %965 = vrot.lane.b32.xlu1 %v963_v49, %s1415_s1 }
0x1485   :  { %184 = vrot.lane.b32.xlu1 %v1049_v50, %s1424_s7 }
0x1489   :  { %412 = vrot.lane.b32.xlu1 %v1051_v10, %s1424_s7 }
0x148d   :  { %640 = vrot.lane.b32.xlu1 %v1053_v52, %s1424_s7 }
0x1491   :  { %868 = vrot.lane.b32.xlu1 %v1055_v53, %s1424_s7 }
0x14f3   :  { %v966_v54 = vpop.permute.xlu1 %965 }
0x14f4   :  { %v968_v55 = vadd.f32 %v966_v54, %v875_v42 }
0x14f6   :  { %1293 = vtanh.f32 %v968_v55 }
0x14f7   :  { %v185_v31 = vpop.permute.xlu1 %184 }
0x14f8   :  { %188 = vst.msk [vmem:[#allocation8] sm:$0xf] %vm187_vm2, %v185_v31 }
0x14fb   :  { %v413_v57 = vpop.permute.xlu1 %412 }
0x14fc   :  { %416 = vst.msk [vmem:[#allocation8 + $0x8] sm:$0xf] %vm187_vm2, %v413_v57 }
0x14ff   :  { %v641_v13 = vpop.permute.xlu1 %640 }
0x1500   :  { %v1294_v58 = vpop.eup %1293  ;;  %644 = vst.msk [vmem:[#allocation8 + $0x10] sm:$0xf] %vm187_vm2, %v641_v13 }
0x1501   :  { %972 = vrot.lane.b32.xlu0 %v1294_v58, %s1424_s7 }
0x1503   :  { %v869_v56 = vpop.permute.xlu1 %868 }
0x1504   :  { %872 = vst.msk [vmem:[#allocation8 + $0x18] sm:$0xf] %vm187_vm2, %v869_v56 }
0x1505   :  { %298 = vrot.lane.b32.xlu0 %v1050_v59, %s1424_s7 }
0x1509   :  { %526 = vrot.lane.b32.xlu0 %v1052_v60, %s1424_s7 }
0x150d   :  { %754 = vrot.lane.b32.xlu0 %v1054_v61, %s1424_s7 }
0x1573   :  { %v973_v63 = vpop.permute.xlu0 %972 }
0x1574   :  { %v975_v3 = vmul.f32 %v973_v63, %v970_v62 }
0x1576   :  { %v977_v5 = vadd.f32 %v976_v2, %v975_v3 }
0x1577   :  { %v299_v51 = vpop.permute.xlu0 %298 }
0x1578   :  { %302 = vst.msk [vmem:[#allocation8 + $0x4] sm:$0xf] %vm187_vm2, %v299_v51  ;;  %988 = vrot.lane.b32.xlu1 %v977_v5, %s1424_s7  ;;  %v1056_v4 = vpack.c.bf16 %v977_v5, %v977_v5 }
0x157a   :  { %982 = vrot.lane.b32.xlu0 %v1056_v4, %s1424_s7 }
0x157b   :  { %v527_v34 = vpop.permute.xlu0 %526 }
0x157c   :  { %530 = vst.msk [vmem:[#allocation8 + $0xc] sm:$0xf] %vm187_vm2, %v527_v34 }
0x157f   :  { %v755_v1 = vpop.permute.xlu0 %754 }
0x1580   :  { %758 = vst.msk [vmem:[#allocation8 + $0x14] sm:$0xf] %vm187_vm2, %v755_v1 }
0x15ea   :  { %v989_v0 = vpop.permute.xlu1 %988 }
0x15eb   :  { %991 = vst.msk [vmem:[#allocation9] sm:$0xff] %vm68_vm1, %v989_v0 }
0x15ec   :  { %v983_v8 = vpop.permute.xlu0 %982 }
0x15ed   :  { %1372 = shalt.err (!%p1369_p0)
}
0x15ee   :  { %s1373_s16 = scalar_lea.hbm %s1701_s5, 128 }
0x15ef   :  { %p1374_p1 = scmp.ne.s32.totalorder %s1701_s5, %s1373_s16  ;;  %p1377_p2 = scmp.lt.u32.totalorder %s1373_s16, %s1701_s5 }
0x15f1   :  { %p1379_p3 = pnand %p1377_p2, %p1374_p1 }
0x15f3   :  { %1382 = shalt.err (!%p1379_p3)
}
0x15f4   :  { %1013 = dma.vmem_to_hbm [thread:$0]  %s1011_s9, 128, %s1701_s5, [#allocation10]   ;;  %986 = vst.msk [vmem:[#allocation8 + $0x1c] sm:$0xf] %vm187_vm2, %v983_v8 }
0x15f5   :  { %s1383_s24 = scalar_lea.vmem %s1661_s11, 512  ;;  %p1388_p5 = scmp.lt.s32.totalorder %s1661_s11, %s1661_s11 }
0x15f6   :  { %p1384_p4 = scmp.ne.s32.totalorder %s1661_s11, %s1383_s24  ;;  %p1389_p6 = scmp.lt.s32.totalorder %s1383_s24, %s1383_s24 }
0x15f8   :  { %p1390_p7 = por %p1389_p6, %p1388_p5 }
0x15fa   :  { %p1391_p8 = pnand %p1390_p7, %p1384_p4 }
0x15fc   :  { %1394 = shalt.err (!%p1391_p8)
}
0x15fd   :  { %s1395_s27 = scalar_lea.hbm %s1700_s4, 512 }
0x15fe   :  { %p1396_p9 = scmp.ne.s32.totalorder %s1700_s4, %s1395_s27  ;;  %p1399_p10 = scmp.lt.u32.totalorder %s1395_s27, %s1700_s4 }
0x1600   :  { %p1401_p11 = pnand %p1399_p10, %p1396_p9 }
0x1602   :  { %1404 = shalt.err (!%p1401_p11)
}
0x1603   :  { %1003 = dma.vmem_to_hbm [thread:$0]  %s1661_s11, 512, %s1700_s4, [#allocation4], %s1415_s1, %s1415_s1, %s1416_s15  }
0x1604   :  { %1409 = dma.done.wait [#allocation4], 512  }
0x1605   :  { %1410 = vsyncadd [#allocation4], 4294966784 }
0x1606   :  { %1411 = dma.done.wait [#allocation10], 128  }
0x1607   :  { %1412 = vsyncadd [#allocation10], 4294967168 }
0x1608   :  { %1020 = vsyncpa [#allocation3], 1 }
0x1609   :  { %1021 = vsyncpa [#allocation6], 1 }
0x160a   :  { %1022 = vsyncpa [#allocation4], 1 }
0x160b   :  { %1023 = vsyncpa [#allocation10], 1 }

</bundles_post_ra>
